<compile_context>
chip_gen: v6e
topology: v6e:2x2x1
jax: 0.10.0
libtpu: 0.0.40
codegen_flags: <defaults>
</compile_context>

<pallas_src>
import functools

import numpy as np
import jax
import jax.numpy as jnp
from jax.experimental import pallas as pl
from jax.experimental.pallas import tpu as pltpu


# ---------------- Pallas kernel (whole Bottleneck block, one image-group per grid step) ----------------

def _bottleneck_kernel(x_ref, w1_ref, b1_ref, w2_ref, m2_ref, b2_ref,
                       w3_ref, b3_ref, o_ref, pad_ref, win_ref,
                       *, planes, W, pad, has_proj):
    L = o_ref.shape[-1]                                  # lanes = images_per_step * H*W

    x = x_ref[...]                                       # (cin, L) f32, lane-dense
    xb = x.astype(jnp.bfloat16)

    # conv1 (1x1) and the projection shortcut, fused into ONE MXU matmul
    # (shared operand x, same small K=cin).  BN scale is already folded into
    # the weights, so the epilogue is bias-add (+ ReLU on the conv1 rows).
    t = jnp.dot(w1_ref[...], xb, preferred_element_type=jnp.float32) + b1_ref[...]
    h1 = jnp.maximum(t[:planes], 0.0)                    # (planes, L)
    sc = t[planes:] if has_proj else x                   # (cout, L) shortcut branch

    # conv2 (3x3, padding=1, stride=1): write h1 into a guard-banded scratch,
    # build the 9 masked shifted windows ONCE as a (9*planes, L) stacked
    # operand along the contraction axis, then do a single matmul.  The masks
    # (host-built, 0/1) kill lanes whose flat shift would wrap across an image
    # row or across images (batch lives in the lane axis).
    zeros_guard = jnp.zeros((planes, pad), jnp.float32)
    pad_ref[:, 0:pad] = zeros_guard                      # guards only, not the whole scratch
    pad_ref[:, pad + L:pad + L + pad] = zeros_guard
    pad_ref[:, pad:pad + L] = h1

    for tap in range(9):
        di, dj = tap // 3 - 1, tap % 3 - 1
        off = di * W + dj
        win_ref[tap * planes:(tap + 1) * planes, :] = (
            pad_ref[:, pad + off:pad + off + L] * m2_ref[tap])

    stacked = win_ref[...].astype(jnp.bfloat16)          # (9*planes, L)
    h2 = jnp.dot(w2_ref[...], stacked, preferred_element_type=jnp.float32) + b2_ref[...]
    h2 = jnp.maximum(h2, 0.0)                            # (planes, L)

    # conv3 (1x1) + BN3 (scale folded), residual add, final ReLU.
    y = jnp.dot(w3_ref[...], h2.astype(jnp.bfloat16),
                preferred_element_type=jnp.float32) + b3_ref[...]
    o_ref[...] = jnp.maximum(y + sc, 0.0).astype(o_ref.dtype)


# ---------------- host-side helpers ----------------

def _conv3x3_tap_masks(H, W):
    """(9, 1, H*W) f32 masks: 1 where tap (di, dj) reads an in-bounds pixel."""
    hh, ww = np.meshgrid(np.arange(H), np.arange(W), indexing="ij")
    masks = np.zeros((9, 1, H * W), np.float32)
    for t in range(9):
        di, dj = t // 3 - 1, t % 3 - 1
        valid = ((hh + di >= 0) & (hh + di < H) &
                 (ww + dj >= 0) & (ww + dj < W))
        masks[t, 0] = valid.reshape(-1).astype(np.float32)
    return masks


def _images_per_step(N, hw, target_lanes=512):
    """Whole images per grid step: >= target_lanes lanes per step to amortize
    per-step overhead / MXU fill, must divide N, and the lane tile must be
    128-aligned unless it spans the whole array."""
    ips = min(N, max(1, -(-target_lanes // hw)))
    while N % ips:
        ips -= 1
    if ips < N and (ips * hw) % 128 != 0:
        ips = N                                          # fall back to one big step
    return ips


def bottleneck_forward(x_nchw, params, stride=1, expansion=4, eps=1e-5):
    """Fused Pallas forward of the PyTorch Bottleneck block (NCHW in/out)."""
    if stride != 1:
        # TODO(synk): strided conv2/shortcut needs lane subsampling; not implemented.
        raise NotImplementedError("Fused Bottleneck Pallas kernel supports stride=1 only.")

    N, cin, H, W = x_nchw.shape
    hw = H * W
    planes = params["conv1_w"].shape[0]
    cout = expansion * planes
    has_proj = "sc_w" in params

    def fold_bn(tag, c):
        scale = params[f"{tag}_g"] / jnp.sqrt(params[f"{tag}_v"] + eps)
        shift = params[f"{tag}_b"] - params[f"{tag}_m"] * scale
        return scale.astype(jnp.float32), shift.astype(jnp.float32)

    s1, b1 = fold_bn("bn1", planes)
    s2, b2 = fold_bn("bn2", planes)
    s3, b3 = fold_bn("bn3", cout)

    # BN scales folded into conv weights; weights fed to the MXU in bf16.
    w1 = params["conv1_w"].reshape(planes, cin) * s1[:, None]
    # OIHW -> lane-dense (planes, 9*planes) slab; tap index along contraction,
    # matching the stacked-window row ordering in the kernel.
    w2 = (jnp.transpose(params["conv2_w"], (0, 2, 3, 1)).reshape(planes, 9 * planes)
          * s2[:, None]).astype(jnp.bfloat16)
    w3 = (params["conv3_w"].reshape(cout, planes) * s3[:, None]).astype(jnp.bfloat16)

    if has_proj:
        ss, bs = fold_bn("bns", cout)
        ws = params["sc_w"].reshape(cout, cin) * ss[:, None]
        w1s = jnp.concatenate([w1, ws], axis=0).astype(jnp.bfloat16)  # (planes+cout, cin)
        b1s = jnp.concatenate([b1, bs])[:, None]
    else:
        w1s = w1.astype(jnp.bfloat16)
        b1s = b1[:, None]

    # Batch folded into the lane axis: x -> (cin, N*H*W).
    x_cl = jnp.transpose(x_nchw, (1, 0, 2, 3)).reshape(cin, N * hw).astype(jnp.float32)

    ips = _images_per_step(N, hw)          # whole images per grid step
    L = ips * hw
    grid = (N // ips,)

    masks = jnp.asarray(np.tile(_conv3x3_tap_masks(H, W), (1, 1, ips)))  # (9,1,L)
    pad = ((W + 1 + 127) // 128) * 128     # lane-aligned spatial-shift guard band

    def rep_spec(a):
        zeros = (0,) * a.ndim
        return pl.BlockSpec(a.shape, lambda g, _z=zeros: _z)

    args = (x_cl, w1s, b1s, w2, masks, b2[:, None], w3, b3[:, None])
    in_specs = [pl.BlockSpec((cin, L), lambda g: (0, g))]
    in_specs += [rep_spec(a) for a in args[1:]]

    kern = functools.partial(_bottleneck_kernel, planes=planes, W=W, pad=pad,
                             has_proj=has_proj)

    out_flat = pl.pallas_call(
        kern,
        out_shape=jax.ShapeDtypeStruct((cout, N * hw), jnp.float32),
        grid=grid,
        in_specs=in_specs,
        out_specs=pl.BlockSpec((cout, L), lambda g: (0, g)),
        scratch_shapes=[pltpu.VMEM((planes, L + 2 * pad), jnp.float32),
                        pltpu.VMEM((9 * planes, L), jnp.float32)],
        compiler_params=pltpu.CompilerParams(
            dimension_semantics=("parallel",)),   # image groups split across v7x's 2 TCs
    )(*args)

    return jnp.transpose(out_flat.reshape(cout, N, H, W), (1, 0, 2, 3))


# ---------------- pure-JAX reference (inference-mode BN) ----------------

def _bn_ref(y, g, b, m, v, eps=1e-5):
    inv = 1.0 / jnp.sqrt(v + eps)
    return ((y - m[None, :, None, None]) * inv[None, :, None, None]
            * g[None, :, None, None] + b[None, :, None, None])


def _conv_ref(x, w, stride=1, padding=0):
    return jax.lax.conv_general_dilated(
        x, w, (stride, stride), [(padding, padding)] * 2,
        dimension_numbers=("NCHW", "OIHW", "NCHW"),
        precision=jax.lax.Precision.HIGHEST)


def bottleneck_reference(x, p, stride=1):
    out = jax.nn.relu(_bn_ref(_conv_ref(x, p["conv1_w"]),
                              p["bn1_g"], p["bn1_b"], p["bn1_m"], p["bn1_v"]))
    out = jax.nn.relu(_bn_ref(_conv_ref(out, p["conv2_w"], stride=stride, padding=1),
                              p["bn2_g"], p["bn2_b"], p["bn2_m"], p["bn2_v"]))
    out = _bn_ref(_conv_ref(out, p["conv3_w"]),
                  p["bn3_g"], p["bn3_b"], p["bn3_m"], p["bn3_v"])
    if "sc_w" in p:
        sc = _bn_ref(_conv_ref(x, p["sc_w"], stride=stride),
                     p["bns_g"], p["bns_b"], p["bns_m"], p["bns_v"])
    else:
        sc = x
    return jax.nn.relu(out + sc)


# ---------------- params ----------------

def init_params(key, in_planes, planes, stride=1, expansion=4):
    out_planes = expansion * planes
    it = iter(jax.random.split(key, 24))

    def conv_w(cout, cin, k):
        bound = 1.0 / np.sqrt(cin * k * k)
        return jax.random.uniform(next(it), (cout, cin, k, k), jnp.float32, -bound, bound)

    def bn_init(tag, c, p):
        p[f"{tag}_g"] = jax.random.uniform(next(it), (c,), jnp.float32, 0.5, 1.5)
        p[f"{tag}_b"] = jax.random.uniform(next(it), (c,), jnp.float32, -0.5, 0.5)
        p[f"{tag}_m"] = 0.1 * jax.random.normal(next(it), (c,), jnp.float32)
        p[f"{tag}_v"] = jax.random.uniform(next(it), (c,), jnp.float32, 0.5, 1.5)

    p = {}
    p["conv1_w"] = conv_w(planes, in_planes, 1)
    bn_init("bn1", planes, p)
    p["conv2_w"] = conv_w(planes, planes, 3)
    bn_init("bn2", planes, p)
    p["conv3_w"] = conv_w(out_planes, planes, 1)
    bn_init("bn3", out_planes, p)
    if stride != 1 or in_planes != out_planes:          # projection shortcut
        p["sc_w"] = conv_w(out_planes, in_planes, 1)
        bn_init("bns", out_planes, p)
    return p


if __name__ == "__main__":
    key = jax.random.PRNGKey(0)
    k_x, k_p = jax.random.split(key)

    # Small Bottleneck instantiation: batch=2, in_planes=16, planes=8 (-> out 32),
    # 16x16 spatial, stride=1 (module default). in_planes != 4*planes, so the
    # projection shortcut (1x1 conv + BN) path is exercised.
    N, in_planes, H, W = 2, 16, 16, 16
    planes, stride = 8, 1

    params = init_params(k_p, in_planes, planes, stride=stride)
    x = jax.random.normal(k_x, (N, in_planes, H, W), jnp.float32)

    fwd = jax.jit(functools.partial(bottleneck_forward, stride=stride))
    out = jax.block_until_ready(fwd(x, params))
    assert out.shape == (N, 4 * planes, H, W), out.shape

    ref = jax.block_until_ready(bottleneck_reference(x, params, stride=stride))
    # bf16 MXU operands with f32 accumulation vs. an f32-HIGHEST reference.
    np.testing.assert_allclose(np.asarray(out), np.asarray(ref), rtol=2e-2, atol=3e-2)
    print("KERNEL_OK")
</pallas_src>

<mosaic_0001>
module attributes {stable_mosaic.version = 11 : i64} {
  func.func @_bottleneck_kernel(%arg0: i32, %arg1: memref<16x512xf32, #tpu.memory_space<vmem>>, %arg2: memref<40x16xbf16, #tpu.memory_space<vmem>>, %arg3: memref<40x1xf32, #tpu.memory_space<vmem>>, %arg4: memref<8x72xbf16, #tpu.memory_space<vmem>>, %arg5: memref<9x1x512xf32, #tpu.memory_space<vmem>>, %arg6: memref<8x1xf32, #tpu.memory_space<vmem>>, %arg7: memref<32x8xbf16, #tpu.memory_space<vmem>>, %arg8: memref<32x1xf32, #tpu.memory_space<vmem>>, %arg9: memref<32x512xf32, #tpu.memory_space<vmem>>, %arg10: memref<8x768xf32, #tpu.memory_space<vmem>>, %arg11: memref<72x512xf32, #tpu.memory_space<vmem>>) attributes {dimension_semantics = [#tpu.dimension_semantics<parallel>], iteration_bounds = array<i64: 1>, scalar_prefetch = 0 : i64, scratch_operands = 2 : i64, tpu.core_type = #tpu.core_type<tc>, window_params = [{transform_indices = @transform_0, window_bounds = array<i64: 16, 512>}, {pipeline_mode = #tpu.pipeline_mode<synchronous>, transform_indices = @transform_1, window_bounds = array<i64: 40, 16>}, {pipeline_mode = #tpu.pipeline_mode<synchronous>, transform_indices = @transform_2, window_bounds = array<i64: 40, 1>}, {pipeline_mode = #tpu.pipeline_mode<synchronous>, transform_indices = @transform_3, window_bounds = array<i64: 8, 72>}, {pipeline_mode = #tpu.pipeline_mode<synchronous>, transform_indices = @transform_4, window_bounds = array<i64: 9, 1, 512>}, {pipeline_mode = #tpu.pipeline_mode<synchronous>, transform_indices = @transform_5, window_bounds = array<i64: 8, 1>}, {pipeline_mode = #tpu.pipeline_mode<synchronous>, transform_indices = @transform_6, window_bounds = array<i64: 32, 8>}, {pipeline_mode = #tpu.pipeline_mode<synchronous>, transform_indices = @transform_7, window_bounds = array<i64: 32, 1>}, {transform_indices = @transform_8, window_bounds = array<i64: 32, 512>}]} {
    %c0 = arith.constant 0 : index
    %c0_0 = arith.constant 0 : index
    %0 = vector.load %arg1[%c0, %c0_0] : memref<16x512xf32, #tpu.memory_space<vmem>>, vector<16x512xf32>
    %1 = arith.truncf %0 : vector<16x512xf32> to vector<16x512xbf16>
    %c0_1 = arith.constant 0 : index
    %c0_2 = arith.constant 0 : index
    %2 = vector.load %arg2[%c0_1, %c0_2] : memref<40x16xbf16, #tpu.memory_space<vmem>>, vector<40x16xbf16>
    %cst = arith.constant dense<0.000000e+00> : vector<40x512xf32>
    %3 = tpu.matmul %2, %1, %cst {dimension_numbers = #tpu.dot_dimension_numbers<[1], [0], [0], [1], [0, 0, 1, 1], [], []>} : vector<40x16xbf16>, vector<16x512xbf16>, vector<40x512xf32> -> vector<40x512xf32>
    %c0_3 = arith.constant 0 : index
    %c0_4 = arith.constant 0 : index
    %4 = vector.load %arg3[%c0_3, %c0_4] : memref<40x1xf32, #tpu.memory_space<vmem>>, vector<40x1xf32>
    %5 = vector.broadcast %4 : vector<40x1xf32> to vector<40x512xf32>
    %6 = arith.addf %3, %5 : vector<40x512xf32>
    %7 = vector.extract_strided_slice %6 {offsets = [0, 0], sizes = [8, 512], strides = [1, 1]} : vector<40x512xf32> to vector<8x512xf32>
    %cst_5 = arith.constant 0.000000e+00 : f32
    %8 = vector.broadcast %cst_5 : f32 to vector<8x512xf32>
    %9 = arith.maximumf %7, %8 : vector<8x512xf32>
    %10 = vector.extract_strided_slice %6 {offsets = [8, 0], sizes = [32, 512], strides = [1, 1]} : vector<40x512xf32> to vector<32x512xf32>
    %cst_6 = arith.constant 0.000000e+00 : f32
    %11 = vector.broadcast %cst_6 : f32 to vector<8x128xf32>
    %c0_7 = arith.constant 0 : index
    %c0_8 = arith.constant 0 : index
    %12 = vector.load %arg10[%c0_7, %c0_8] : memref<8x768xf32, #tpu.memory_space<vmem>>, vector<8x128xf32>
    tpu.vector_store %arg10[%c0_7, %c0_8], %11 {strides = array<i32>} : memref<8x768xf32, #tpu.memory_space<vmem>>, vector<8x128xf32>,
    %c0_9 = arith.constant 0 : index
    %c640 = arith.constant 640 : index
    %13 = vector.load %arg10[%c0_9, %c640] : memref<8x768xf32, #tpu.memory_space<vmem>>, vector<8x128xf32>
    tpu.vector_store %arg10[%c0_9, %c640], %11 {strides = array<i32>} : memref<8x768xf32, #tpu.memory_space<vmem>>, vector<8x128xf32>,
    %c0_10 = arith.constant 0 : index
    %c128 = arith.constant 128 : index
    %14 = vector.load %arg10[%c0_10, %c128] : memref<8x768xf32, #tpu.memory_space<vmem>>, vector<8x512xf32>
    tpu.vector_store %arg10[%c0_10, %c128], %9 {strides = array<i32>} : memref<8x768xf32, #tpu.memory_space<vmem>>, vector<8x512xf32>,
    %c0_11 = arith.constant 0 : index
    %c111 = arith.constant 111 : index
    %15 = vector.load %arg10[%c0_11, %c111] : memref<8x768xf32, #tpu.memory_space<vmem>>, vector<8x512xf32>
    %c0_12 = arith.constant 0 : index
    %c0_13 = arith.constant 0 : index
    %c0_14 = arith.constant 0 : index
    %16 = vector.load %arg5[%c0_12, %c0_13, %c0_14] : memref<9x1x512xf32, #tpu.memory_space<vmem>>, vector<1x1x512xf32>
    %17 = vector.shape_cast %16 : vector<1x1x512xf32> to vector<1x512xf32>
    %18 = vector.broadcast %17 : vector<1x512xf32> to vector<8x512xf32>
    %19 = arith.mulf %15, %18 : vector<8x512xf32>
    %c0_15 = arith.constant 0 : index
    %c0_16 = arith.constant 0 : index
    %20 = vector.load %arg11[%c0_15, %c0_16] : memref<72x512xf32, #tpu.memory_space<vmem>>, vector<8x512xf32>
    tpu.vector_store %arg11[%c0_15, %c0_16], %19 {strides = array<i32>} : memref<72x512xf32, #tpu.memory_space<vmem>>, vector<8x512xf32>,
    %c0_17 = arith.constant 0 : index
    %c112 = arith.constant 112 : index
    %21 = vector.load %arg10[%c0_17, %c112] : memref<8x768xf32, #tpu.memory_space<vmem>>, vector<8x512xf32>
    %c1 = arith.constant 1 : index
    %c0_18 = arith.constant 0 : index
    %c0_19 = arith.constant 0 : index
    %22 = vector.load %arg5[%c1, %c0_18, %c0_19] : memref<9x1x512xf32, #tpu.memory_space<vmem>>, vector<1x1x512xf32>
    %23 = vector.shape_cast %22 : vector<1x1x512xf32> to vector<1x512xf32>
    %24 = vector.broadcast %23 : vector<1x512xf32> to vector<8x512xf32>
    %25 = arith.mulf %21, %24 : vector<8x512xf32>
    %c8 = arith.constant 8 : index
    %c0_20 = arith.constant 0 : index
    %26 = vector.load %arg11[%c8, %c0_20] : memref<72x512xf32, #tpu.memory_space<vmem>>, vector<8x512xf32>
    tpu.vector_store %arg11[%c8, %c0_20], %25 {strides = array<i32>} : memref<72x512xf32, #tpu.memory_space<vmem>>, vector<8x512xf32>,
    %c0_21 = arith.constant 0 : index
    %c113 = arith.constant 113 : index
    %27 = vector.load %arg10[%c0_21, %c113] : memref<8x768xf32, #tpu.memory_space<vmem>>, vector<8x512xf32>
    %c2 = arith.constant 2 : index
    %c0_22 = arith.constant 0 : index
    %c0_23 = arith.constant 0 : index
    %28 = vector.load %arg5[%c2, %c0_22, %c0_23] : memref<9x1x512xf32, #tpu.memory_space<vmem>>, vector<1x1x512xf32>
    %29 = vector.shape_cast %28 : vector<1x1x512xf32> to vector<1x512xf32>
    %30 = vector.broadcast %29 : vector<1x512xf32> to vector<8x512xf32>
    %31 = arith.mulf %27, %30 : vector<8x512xf32>
    %c16 = arith.constant 16 : index
    %c0_24 = arith.constant 0 : index
    %32 = vector.load %arg11[%c16, %c0_24] : memref<72x512xf32, #tpu.memory_space<vmem>>, vector<8x512xf32>
    tpu.vector_store %arg11[%c16, %c0_24], %31 {strides = array<i32>} : memref<72x512xf32, #tpu.memory_space<vmem>>, vector<8x512xf32>,
    %c0_25 = arith.constant 0 : index
    %c127 = arith.constant 127 : index
    %33 = vector.load %arg10[%c0_25, %c127] : memref<8x768xf32, #tpu.memory_space<vmem>>, vector<8x512xf32>
    %c3 = arith.constant 3 : index
    %c0_26 = arith.constant 0 : index
    %c0_27 = arith.constant 0 : index
    %34 = vector.load %arg5[%c3, %c0_26, %c0_27] : memref<9x1x512xf32, #tpu.memory_space<vmem>>, vector<1x1x512xf32>
    %35 = vector.shape_cast %34 : vector<1x1x512xf32> to vector<1x512xf32>
    %36 = vector.broadcast %35 : vector<1x512xf32> to vector<8x512xf32>
    %37 = arith.mulf %33, %36 : vector<8x512xf32>
    %c24 = arith.constant 24 : index
    %c0_28 = arith.constant 0 : index
    %38 = vector.load %arg11[%c24, %c0_28] : memref<72x512xf32, #tpu.memory_space<vmem>>, vector<8x512xf32>
    tpu.vector_store %arg11[%c24, %c0_28], %37 {strides = array<i32>} : memref<72x512xf32, #tpu.memory_space<vmem>>, vector<8x512xf32>,
    %c0_29 = arith.constant 0 : index
    %c128_30 = arith.constant 128 : index
    %39 = vector.load %arg10[%c0_29, %c128_30] : memref<8x768xf32, #tpu.memory_space<vmem>>, vector<8x512xf32>
    %c4 = arith.constant 4 : index
    %c0_31 = arith.constant 0 : index
    %c0_32 = arith.constant 0 : index
    %40 = vector.load %arg5[%c4, %c0_31, %c0_32] : memref<9x1x512xf32, #tpu.memory_space<vmem>>, vector<1x1x512xf32>
    %41 = vector.shape_cast %40 : vector<1x1x512xf32> to vector<1x512xf32>
    %42 = vector.broadcast %41 : vector<1x512xf32> to vector<8x512xf32>
    %43 = arith.mulf %39, %42 : vector<8x512xf32>
    %c32 = arith.constant 32 : index
    %c0_33 = arith.constant 0 : index
    %44 = vector.load %arg11[%c32, %c0_33] : memref<72x512xf32, #tpu.memory_space<vmem>>, vector<8x512xf32>
    tpu.vector_store %arg11[%c32, %c0_33], %43 {strides = array<i32>} : memref<72x512xf32, #tpu.memory_space<vmem>>, vector<8x512xf32>,
    %c0_34 = arith.constant 0 : index
    %c129 = arith.constant 129 : index
    %45 = vector.load %arg10[%c0_34, %c129] : memref<8x768xf32, #tpu.memory_space<vmem>>, vector<8x512xf32>
    %c5 = arith.constant 5 : index
    %c0_35 = arith.constant 0 : index
    %c0_36 = arith.constant 0 : index
    %46 = vector.load %arg5[%c5, %c0_35, %c0_36] : memref<9x1x512xf32, #tpu.memory_space<vmem>>, vector<1x1x512xf32>
    %47 = vector.shape_cast %46 : vector<1x1x512xf32> to vector<1x512xf32>
    %48 = vector.broadcast %47 : vector<1x512xf32> to vector<8x512xf32>
    %49 = arith.mulf %45, %48 : vector<8x512xf32>
    %c40 = arith.constant 40 : index
    %c0_37 = arith.constant 0 : index
    %50 = vector.load %arg11[%c40, %c0_37] : memref<72x512xf32, #tpu.memory_space<vmem>>, vector<8x512xf32>
    tpu.vector_store %arg11[%c40, %c0_37], %49 {strides = array<i32>} : memref<72x512xf32, #tpu.memory_space<vmem>>, vector<8x512xf32>,
    %c0_38 = arith.constant 0 : index
    %c143 = arith.constant 143 : index
    %51 = vector.load %arg10[%c0_38, %c143] : memref<8x768xf32, #tpu.memory_space<vmem>>, vector<8x512xf32>
    %c6 = arith.constant 6 : index
    %c0_39 = arith.constant 0 : index
    %c0_40 = arith.constant 0 : index
    %52 = vector.load %arg5[%c6, %c0_39, %c0_40] : memref<9x1x512xf32, #tpu.memory_space<vmem>>, vector<1x1x512xf32>
    %53 = vector.shape_cast %52 : vector<1x1x512xf32> to vector<1x512xf32>
    %54 = vector.broadcast %53 : vector<1x512xf32> to vector<8x512xf32>
    %55 = arith.mulf %51, %54 : vector<8x512xf32>
    %c48 = arith.constant 48 : index
    %c0_41 = arith.constant 0 : index
    %56 = vector.load %arg11[%c48, %c0_41] : memref<72x512xf32, #tpu.memory_space<vmem>>, vector<8x512xf32>
    tpu.vector_store %arg11[%c48, %c0_41], %55 {strides = array<i32>} : memref<72x512xf32, #tpu.memory_space<vmem>>, vector<8x512xf32>,
    %c0_42 = arith.constant 0 : index
    %c144 = arith.constant 144 : index
    %57 = vector.load %arg10[%c0_42, %c144] : memref<8x768xf32, #tpu.memory_space<vmem>>, vector<8x512xf32>
    %c7 = arith.constant 7 : index
    %c0_43 = arith.constant 0 : index
    %c0_44 = arith.constant 0 : index
    %58 = vector.load %arg5[%c7, %c0_43, %c0_44] : memref<9x1x512xf32, #tpu.memory_space<vmem>>, vector<1x1x512xf32>
    %59 = vector.shape_cast %58 : vector<1x1x512xf32> to vector<1x512xf32>
    %60 = vector.broadcast %59 : vector<1x512xf32> to vector<8x512xf32>
    %61 = arith.mulf %57, %60 : vector<8x512xf32>
    %c56 = arith.constant 56 : index
    %c0_45 = arith.constant 0 : index
    %62 = vector.load %arg11[%c56, %c0_45] : memref<72x512xf32, #tpu.memory_space<vmem>>, vector<8x512xf32>
    tpu.vector_store %arg11[%c56, %c0_45], %61 {strides = array<i32>} : memref<72x512xf32, #tpu.memory_space<vmem>>, vector<8x512xf32>,
    %c0_46 = arith.constant 0 : index
    %c145 = arith.constant 145 : index
    %63 = vector.load %arg10[%c0_46, %c145] : memref<8x768xf32, #tpu.memory_space<vmem>>, vector<8x512xf32>
    %c8_47 = arith.constant 8 : index
    %c0_48 = arith.constant 0 : index
    %c0_49 = arith.constant 0 : index
    %64 = vector.load %arg5[%c8_47, %c0_48, %c0_49] : memref<9x1x512xf32, #tpu.memory_space<vmem>>, vector<1x1x512xf32>
    %65 = vector.shape_cast %64 : vector<1x1x512xf32> to vector<1x512xf32>
    %66 = vector.broadcast %65 : vector<1x512xf32> to vector<8x512xf32>
    %67 = arith.mulf %63, %66 : vector<8x512xf32>
    %c64 = arith.constant 64 : index
    %c0_50 = arith.constant 0 : index
    %68 = vector.load %arg11[%c64, %c0_50] : memref<72x512xf32, #tpu.memory_space<vmem>>, vector<8x512xf32>
    tpu.vector_store %arg11[%c64, %c0_50], %67 {strides = array<i32>} : memref<72x512xf32, #tpu.memory_space<vmem>>, vector<8x512xf32>,
    %c0_51 = arith.constant 0 : index
    %c0_52 = arith.constant 0 : index
    %69 = vector.load %arg11[%c0_51, %c0_52] : memref<72x512xf32, #tpu.memory_space<vmem>>, vector<72x512xf32>
    %70 = arith.truncf %69 : vector<72x512xf32> to vector<72x512xbf16>
    %c0_53 = arith.constant 0 : index
    %c0_54 = arith.constant 0 : index
    %71 = vector.load %arg4[%c0_53, %c0_54] : memref<8x72xbf16, #tpu.memory_space<vmem>>, vector<8x72xbf16>
    %cst_55 = arith.constant dense<0.000000e+00> : vector<8x512xf32>
    %72 = tpu.matmul %71, %70, %cst_55 {dimension_numbers = #tpu.dot_dimension_numbers<[1], [0], [0], [1], [0, 0, 1, 1], [], []>} : vector<8x72xbf16>, vector<72x512xbf16>, vector<8x512xf32> -> vector<8x512xf32>
    %c0_56 = arith.constant 0 : index
    %c0_57 = arith.constant 0 : index
    %73 = vector.load %arg6[%c0_56, %c0_57] : memref<8x1xf32, #tpu.memory_space<vmem>>, vector<8x1xf32>
    %74 = vector.broadcast %73 : vector<8x1xf32> to vector<8x512xf32>
    %75 = arith.addf %72, %74 : vector<8x512xf32>
    %cst_58 = arith.constant 0.000000e+00 : f32
    %76 = vector.broadcast %cst_58 : f32 to vector<8x512xf32>
    %77 = arith.maximumf %75, %76 : vector<8x512xf32>
    %c0_59 = arith.constant 0 : index
    %c0_60 = arith.constant 0 : index
    %78 = vector.load %arg7[%c0_59, %c0_60] : memref<32x8xbf16, #tpu.memory_space<vmem>>, vector<32x8xbf16>
    %79 = arith.truncf %77 : vector<8x512xf32> to vector<8x512xbf16>
    %cst_61 = arith.constant dense<0.000000e+00> : vector<32x512xf32>
    %80 = tpu.matmul %78, %79, %cst_61 {dimension_numbers = #tpu.dot_dimension_numbers<[1], [0], [0], [1], [0, 0, 1, 1], [], []>} : vector<32x8xbf16>, vector<8x512xbf16>, vector<32x512xf32> -> vector<32x512xf32>
    %c0_62 = arith.constant 0 : index
    %c0_63 = arith.constant 0 : index
    %81 = vector.load %arg8[%c0_62, %c0_63] : memref<32x1xf32, #tpu.memory_space<vmem>>, vector<32x1xf32>
    %82 = vector.broadcast %81 : vector<32x1xf32> to vector<32x512xf32>
    %83 = arith.addf %80, %82 : vector<32x512xf32>
    %84 = arith.addf %83, %10 : vector<32x512xf32>
    %cst_64 = arith.constant 0.000000e+00 : f32
    %85 = vector.broadcast %cst_64 : f32 to vector<32x512xf32>
    %86 = arith.maximumf %84, %85 : vector<32x512xf32>
    %c0_65 = arith.constant 0 : index
    %c0_66 = arith.constant 0 : index
    %87 = vector.load %arg9[%c0_65, %c0_66] : memref<32x512xf32, #tpu.memory_space<vmem>>, vector<32x512xf32>
    tpu.vector_store %arg9[%c0_65, %c0_66], %86 {strides = array<i32>} : memref<32x512xf32, #tpu.memory_space<vmem>>, vector<32x512xf32>,
    return
  }
  func.func @transform_0(%arg0: i32) -> (i32, i32) {
    %c0_i32 = arith.constant 0 : i32
    %c0_i32_0 = arith.constant 0 : i32
    return %c0_i32, %arg0 : i32, i32
  }
  func.func @transform_1(%arg0: i32) -> (i32, i32) {
    %c0_i32 = arith.constant 0 : i32
    %c0_i32_0 = arith.constant 0 : i32
    %c0_i32_1 = arith.constant 0 : i32
    return %c0_i32, %c0_i32_0 : i32, i32
  }
  func.func @transform_2(%arg0: i32) -> (i32, i32) {
    %c0_i32 = arith.constant 0 : i32
    %c0_i32_0 = arith.constant 0 : i32
    %c0_i32_1 = arith.constant 0 : i32
    return %c0_i32, %c0_i32_0 : i32, i32
  }
  func.func @transform_3(%arg0: i32) -> (i32, i32) {
    %c0_i32 = arith.constant 0 : i32
    %c0_i32_0 = arith.constant 0 : i32
    %c0_i32_1 = arith.constant 0 : i32
    return %c0_i32, %c0_i32_0 : i32, i32
  }
  func.func @transform_4(%arg0: i32) -> (i32, i32, i32) {
    %c0_i32 = arith.constant 0 : i32
    %c0_i32_0 = arith.constant 0 : i32
    %c0_i32_1 = arith.constant 0 : i32
    %c0_i32_2 = arith.constant 0 : i32
    return %c0_i32, %c0_i32_0, %c0_i32_1 : i32, i32, i32
  }
  func.func @transform_5(%arg0: i32) -> (i32, i32) {
    %c0_i32 = arith.constant 0 : i32
    %c0_i32_0 = arith.constant 0 : i32
    %c0_i32_1 = arith.constant 0 : i32
    return %c0_i32, %c0_i32_0 : i32, i32
  }
  func.func @transform_6(%arg0: i32) -> (i32, i32) {
    %c0_i32 = arith.constant 0 : i32
    %c0_i32_0 = arith.constant 0 : i32
    %c0_i32_1 = arith.constant 0 : i32
    return %c0_i32, %c0_i32_0 : i32, i32
  }
  func.func @transform_7(%arg0: i32) -> (i32, i32) {
    %c0_i32 = arith.constant 0 : i32
    %c0_i32_0 = arith.constant 0 : i32
    %c0_i32_1 = arith.constant 0 : i32
    return %c0_i32, %c0_i32_0 : i32, i32
  }
  func.func @transform_8(%arg0: i32) -> (i32, i32) {
    %c0_i32 = arith.constant 0 : i32
    %c0_i32_0 = arith.constant 0 : i32
    return %c0_i32, %arg0 : i32, i32
  }
}

</mosaic_0001>

<bundles_post_ra>
// kernel: bottleneck_forward.1
= control target key start
LH: loop header
LB: loop body
LE: loop exit
PB: predicated region body
PF: predicated region fallthrough
CT: control target
= control target key end

     0   :  { %v239_v0 = vlaneseq  ;;  %v1359_v4 = vmov 0   ;;  %vm90_vm0 = vcmask 130048   ;;  %s1361_s29 = smov 15   ;;  %s1362_s10 = smov 16   ;;  %vm292_vm1 = vcmask 138240   ;;  %s1906_s0 = inlined_call_operand.vmem [shape: f32[16,512], index: 0, kind: input, shape index: {}]   ;;  %s1907_s1 = inlined_call_operand.vmem [shape: bf16[40,16], index: 1, kind: input, shape index: {}]   ;;  %s1908_s2 = inlined_call_operand.vmem [shape: f32[40,1], index: 2, kind: input, shape index: {}]   ;;  %s1909_s4 = inlined_call_operand.vmem [shape: f32[9,1,512], index: 4, kind: input, shape index: {}]   ;;  %s1910_s7 = inlined_call_operand.vmem [shape: f32[32,1], index: 7, kind: input, shape index: {}]   ;;  %s1911_s5 = inlined_call_operand.vmem [shape: f32[8,1], index: 5, kind: input, shape index: {}]   ;;  %s1912_s3 = inlined_call_operand.vmem [shape: bf16[8,72], index: 3, kind: input, shape index: {}]   ;;  %s1913_s6 = inlined_call_operand.vmem [shape: bf16[32,8], index: 6, kind: input, shape index: {}]   ;;  %s1914_s8 = inlined_call_operand.vmem [shape: f32[32,512], index: 8, kind: output, shape index: {}]  }
   0x1   :  { %v31_v1 = vld [vmem:[%s1906_s0 + $0x8] sm:$0xff]  ;;  %v33_v3 = vld [vmem:[%s1906_s0 + $0x18] sm:$0xff]  ;;  %132 = vmatprep.mubr.bf16.mxu0 %v1359_v4  ;;  %193 = vmatprep.mubr.bf16.mxu1 %v1359_v4  ;;  %v30_v7 = vld [vmem:[%s1906_s0] sm:$0xff]  ;;  %s1363_s13 = smov 1   ;;  %s1364_s16 = smov 113   ;;  %vm439_vm2 = vcmask 121856  }
   0x2   :  { %v35_v2 = vld [vmem:[%s1906_s0 + $0x28] sm:$0xff]  ;;  %v37_v6 = vld [vmem:[%s1906_s0 + $0x38] sm:$0xff]  ;;  %v34_v8 = vld [vmem:[%s1906_s0 + $0x20] sm:$0xff]  ;;  %1272 = vset.pattern.permute.xlu0 %v1359_v4  ;;  %v240_v9 = vshrl.u32 %v239_v0, 7  ;;  %1353 = vset.pattern.permute.xlu1 %v1359_v4  ;;  %s1365_s21 = smov 127   ;;  %s1366_s24 = smov 111  }
   0x3   :  { %v39_v5 = vpack.c.bf16 %v35_v2, %v31_v1  ;;  %v41_v10 = vpack.c.bf16 %v37_v6, %v33_v3  ;;  %v38_v11 = vpack.c.bf16 %v34_v8, %v30_v7  ;;  %v32_v12 = vld [vmem:[%s1906_s0 + $0x10] sm:$0xff]  ;;  %v1354_v15 = vld [vmem:[%s1907_s1] sm:$0xff]   ;;  %v1248_v25 = vld [vmem:[%s1909_s4 + $0x18] sm:$0xf]  ;;  %s1367_s27 = smov 112   ;;  %vm513_vm3 = vcmask 7168  }
   0x4   :  { %v36_v13 = vld [vmem:[%s1906_s0 + $0x30] sm:$0xff]  ;;  %v47_v16 = vld [vmem:[%s1908_s2] sm:$0xff]  ;;  %v1447_v17 = vsub.s32 1, %v240_v9  ;;  %v1449_v18 = vsub.s32 0, %v240_v9  ;;  %v1454_v20 = vsub.s32 2, %v240_v9  ;;  %v1458_v23 = vsub.s32 3, %v240_v9 }
   0x5   :  { %114 = vmatprep.subr.bf16.mxu0 %v39_v5  ;;  %v40_v14 = vpack.c.bf16 %v36_v13, %v32_v12  ;;  %175 = vmatprep.subr.bf16.mxu1 %v41_v10  ;;  %v1250_v19 = vld [vmem:[%s1909_s4 + $0x20] sm:$0xf]  ;;  %s1360_s0 = smov 17   ;;  %v1249_v30 = vld [vmem:[%s1909_s4 + $0x1c] sm:$0xf]  ;;  %v1355_v47 = vld [vmem:[%s1907_s1 + $0x8] sm:$0xff]  }
   0x6   :  { %115 = vmatpush1.bf16.msra.mxu0 %v38_v11  ;;  %54 = vperm.xlu0 %1272, %v47_v16   ;;  %v792_v21 = vrot.slane %v1250_v19, %v1447_v17  ;;  %v788_v22 = vrot.slane %v1250_v19, %v1449_v18  ;;  %v796_v24 = vrot.slane %v1250_v19, %v1454_v20  ;;  %v1247_v35 = vld [vmem:[%s1909_s4 + $0x14] sm:$0xf]  ;;  %v1244_v40 = vld [vmem:[%s1909_s4 + $0x8] sm:$0xf]  ;;  %v1245_v45 = vld [vmem:[%s1909_s4 + $0xc] sm:$0xf] }
   0x7   :  { %176 = vmatpush1.bf16.msra.mxu1 %v40_v14  ;;  %v800_v26 = vrot.slane %v1250_v19, %v1458_v23  ;;  %v644_v27 = vrot.slane %v1248_v25, %v1449_v18  ;;  %v648_v28 = vrot.slane %v1248_v25, %v1447_v17  ;;  %v652_v29 = vrot.slane %v1248_v25, %v1454_v20  ;;  %v237_v51 = vld [vmem:[%s1909_s4] sm:$0xf]  ;;  %v1243_v56 = vld [vmem:[%s1909_s4 + $0x4] sm:$0xf] }
   0x8   :  { %803 = vrot.lane.b32.xlu1 %v792_v21, %s1360_s0  ;;  %v656_v31 = vrot.slane %v1248_v25, %v1458_v23  ;;  %v716_v32 = vrot.slane %v1249_v30, %v1449_v18  ;;  %v720_v33 = vrot.slane %v1249_v30, %v1447_v17  ;;  %v724_v34 = vrot.slane %v1249_v30, %v1454_v20 }
   0x9   :  { %1237 = vmatmul.mubr.msk.bf16.vlgmr.msra.gmra.mxu0 %vm90_vm0, %v1354_v15  ;;  %v728_v36 = vrot.slane %v1249_v30, %v1458_v23  ;;  %v572_v37 = vrot.slane %v1247_v35, %v1449_v18  ;;  %v576_v38 = vrot.slane %v1247_v35, %v1447_v17  ;;  %v580_v39 = vrot.slane %v1247_v35, %v1454_v20 }
   0xa   :  { %1240 = vmatmul.mubr.msk.bf16.vlgmr.msra.gmra.mxu1 %vm90_vm0, %v1354_v15  ;;  %801 = vrot.lane.b32.xlu0 %v788_v22, %s1360_s0  ;;  %v584_v41 = vrot.slane %v1247_v35, %v1458_v23  ;;  %v389_v42 = vrot.slane %v1244_v40, %v1449_v18  ;;  %v393_v43 = vrot.slane %v1244_v40, %v1447_v17  ;;  %vm410_vm4 = vcmask 924672  }
   0xb   :  { %142 = vmatprep.mubr.bf16.mxu0 %v1359_v4  ;;  %203 = vmatprep.mubr.bf16.mxu1 %v1359_v4  ;;  %v397_v44 = vrot.slane %v1244_v40, %v1454_v20  ;;  %v401_v46 = vrot.slane %v1244_v40, %v1458_v23  ;;  %v463_v48 = vrot.slane %v1245_v45, %v1449_v18  ;;  %vm484_vm5 = vcmask 1039360  }
   0xc   :  { %805 = vrot.lane.b32.xlu1 %v796_v24, %s1360_s0  ;;  %v467_v49 = vrot.slane %v1245_v45, %v1447_v17  ;;  %v471_v50 = vrot.slane %v1245_v45, %v1454_v20  ;;  %v475_v52 = vrot.slane %v1245_v45, %v1458_v23  ;;  %v242_v53 = vrot.slane %v237_v51, %v1449_v18 }
   0xd   :  { %v246_v54 = vrot.slane %v237_v51, %v1447_v17  ;;  %v250_v55 = vrot.slane %v237_v51, %v1454_v20  ;;  %v254_v57 = vrot.slane %v237_v51, %v1458_v23  ;;  %v316_v58 = vrot.slane %v1243_v56, %v1449_v18 }
   0xe   :  { %807 = vrot.lane.b32.xlu0 %v800_v26, %s1360_s0  ;;  %v320_v59 = vrot.slane %v1243_v56, %v1447_v17  ;;  %v324_v60 = vrot.slane %v1243_v56, %v1454_v20  ;;  %v328_v61 = vrot.slane %v1243_v56, %v1458_v23  ;;  %vm263_vm6 = vcmask 908288  }
   0xf   :  { %vm337_vm7 = vcmask 916480   ;;  %vm916_vm8 = vcmask 1043456   ;;  %vm912_vm9 = vcmask 588800   ;;  %vm1057_vm10 = vcmask 64512  }
  0x10   :  { %657 = vrot.lane.b32.xlu1 %v644_v27, %s1361_s29 }
  0x11   :  { %1238 = vmatmul.mubr.msk.bf16.gmra.mxu0 %vm90_vm0, %v1355_v47 }
  0x12   :  { %659 = vrot.lane.b32.xlu0 %v648_v28, %s1361_s29  ;;  %1241 = vmatmul.mubr.msk.bf16.gmra.mxu1 %vm90_vm0, %v1355_v47 }
  0x13   :  { %152 = vmatprep.mubr.bf16.mxu0 %v1359_v4  ;;  %213 = vmatprep.mubr.bf16.mxu1 %v1359_v4 }
  0x14   :  { %661 = vrot.lane.b32.xlu1 %v652_v29, %s1361_s29 }
  0x16   :  { %663 = vrot.lane.b32.xlu0 %v656_v31, %s1361_s29 }
  0x18   :  { %729 = vrot.lane.b32.xlu1 %v716_v32, %s1362_s10 }
  0x1a   :  { %731 = vrot.lane.b32.xlu0 %v720_v33, %s1362_s10 }
  0x1c   :  { %733 = vrot.lane.b32.xlu1 %v724_v34, %s1362_s10 }
  0x1e   :  { %735 = vrot.lane.b32.xlu0 %v728_v36, %s1362_s10 }
  0x20   :  { %585 = vrot.lane.b32.xlu1 %v572_v37, %s1363_s13 }
  0x22   :  { %587 = vrot.lane.b32.xlu0 %v576_v38, %s1363_s13 }
  0x24   :  { %589 = vrot.lane.b32.xlu1 %v580_v39, %s1363_s13 }
  0x26   :  { %591 = vrot.lane.b32.xlu0 %v584_v41, %s1363_s13 }
  0x28   :  { %402 = vrot.lane.b32.xlu1 %v389_v42, %s1364_s16 }
  0x2a   :  { %404 = vrot.lane.b32.xlu0 %v393_v43, %s1364_s16 }
  0x2c   :  { %406 = vrot.lane.b32.xlu1 %v397_v44, %s1364_s16 }
  0x2e   :  { %408 = vrot.lane.b32.xlu0 %v401_v46, %s1364_s16 }
  0x30   :  { %476 = vrot.lane.b32.xlu1 %v463_v48, %s1365_s21 }
  0x32   :  { %478 = vrot.lane.b32.xlu0 %v467_v49, %s1365_s21 }
  0x34   :  { %480 = vrot.lane.b32.xlu1 %v471_v50, %s1365_s21 }
  0x36   :  { %482 = vrot.lane.b32.xlu0 %v475_v52, %s1365_s21 }
  0x38   :  { %255 = vrot.lane.b32.xlu1 %v242_v53, %s1366_s24 }
  0x3a   :  { %257 = vrot.lane.b32.xlu0 %v246_v54, %s1366_s24 }
  0x3c   :  { %259 = vrot.lane.b32.xlu1 %v250_v55, %s1366_s24 }
  0x3e   :  { %261 = vrot.lane.b32.xlu0 %v254_v57, %s1366_s24 }
  0x40   :  { %329 = vrot.lane.b32.xlu1 %v316_v58, %s1367_s27 }
  0x42   :  { %331 = vrot.lane.b32.xlu0 %v320_v59, %s1367_s27 }
  0x44   :  { %333 = vrot.lane.b32.xlu1 %v324_v60, %s1367_s27 }
  0x46   :  { %335 = vrot.lane.b32.xlu0 %v328_v61, %s1367_s27 }
  0x7a   :  { %v804_v62 = vpop.permute.xlu1 %803 }
  0x7e   :  { %v806_v63 = vpop.permute.xlu1 %805 }
  0x7f   :  { %v810_v0 = vsel %vm292_vm1, %v804_v62, %v806_v63 }
  0x81   :  { %v55_v1 = vpop.permute.xlu0 %54 }
  0x82   :  { %v1555_v2 = vpop.permute.xlu1 %657 }
  0x85   :  { %v802_v3 = vpop.permute.xlu0 %801 }
  0x86   :  { %v1557_v5 = vpop.permute.xlu1 %661  ;;  %v809_v45 = vsel %vm292_vm1, %v802_v3, %v804_v62 }
  0x89   :  { %v808_v6 = vpop.permute.xlu0 %807 }
  0x8a   :  { %v811_v7 = vsel %vm292_vm1, %v806_v63, %v808_v6  ;;  %v821_v8 = vmul.f32 0.0, %v808_v6  ;;  %v730_v9 = vpop.permute.xlu1 %729 }
  0x8c   :  { %835 = vrot.lane.b32.xlu1 %v821_v8, %s1366_s24 }
  0x8d   :  { %v1565_v14 = vpop.permute.xlu0 %659 }
  0x8e   :  { %v734_v10 = vpop.permute.xlu1 %733 }
  0x91   :  { %v664_v19 = vpop.permute.xlu0 %663 }
  0x92   :  { %v586_v11 = vpop.permute.xlu1 %585  ;;  %v667_v49 = vsel %vm439_vm2, %v1557_v5, %v664_v19  ;;  %v677_v60 = vmul.f32 0.0, %v664_v19  ;;  %v666_v19 = vsel %vm439_vm2, %v1565_v14, %v1557_v5 }
  0x95   :  { %v732_v24 = vpop.permute.xlu0 %731 }
  0x96   :  { %v1561_v12 = vpop.permute.xlu1 %589  ;;  %v737_v50 = vsel %vm90_vm0, %v730_v9, %v732_v24  ;;  %v738_v58 = vsel %vm90_vm0, %v732_v24, %v734_v10 }
  0x99   :  { %v736_v25 = vpop.permute.xlu0 %735 }
  0x9a   :  { %v1563_v13 = vpop.permute.xlu1 %402  ;;  %v749_v24 = vmul.f32 0.0, %v736_v25 }
  0x9b   :  { %v419_v15 = vmul.f32 0.0, %v1563_v13 }
  0x9d   :  { %429 = vrot.lane.b32.xlu1 %v419_v15, %s1361_s29  ;;  %v588_v26 = vpop.permute.xlu0 %587 }
  0x9e   :  { %v1569_v16 = vpop.permute.xlu1 %406  ;;  %v593_v61 = vsel %vm513_vm3, %v586_v11, %v588_v26  ;;  %v594_v62 = vsel %vm513_vm3, %v588_v26, %v1561_v12 }
  0xa1   :  { %v592_v27 = vpop.permute.xlu0 %591 }
  0xa2   :  { %v1571_v21 = vpop.permute.xlu1 %476 }
  0xa3   :  { %v493_v22 = vmul.f32 0.0, %v1571_v21 }
  0xa5   :  { %503 = vrot.lane.b32.xlu0 %v493_v22, %s1363_s13  ;;  %v1575_v28 = vpop.permute.xlu0 %404 }
  0xa6   :  { %v1585_v41 = vpop.permute.xlu1 %480  ;;  %v412_v5 = vsel %vm410_vm4, %v1575_v28, %v1569_v16 }
  0xa9   :  { %v1577_v29 = vpop.permute.xlu0 %408 }
  0xaa   :  { %v1613_v63 = vpop.permute.xlu1 %255 }
  0xad   :  { %v1579_v35 = vpop.permute.xlu0 %478 }
  0xb1   :  { %v1604_v53 = vpop.permute.xlu0 %482 }
  0xb5   :  { %v258_v26 = vpop.permute.xlu0 %257 }
  0xc9   :  { %v134_v30 = vpop.f32.mrf.mxu0 }
  0xca   :  { %v135_v31 = vadd.f32 %v134_v30, %v55_v1  ;;  %v195_v32 = vpop.f32.mrf.mxu1  ;;  %v605_v30 = vmul.f32 0.0, %v592_v27 }
  0xcb   :  { %v196_v33 = vadd.f32 %v195_v32, %v55_v1  ;;  %v136_v34 = vpop.f32.mrf.mxu0 }
  0xcc   :  { %v1581_v36 = vmax.f32 %v135_v31, 0.0  ;;  %v137_v37 = vadd.f32 %v136_v34, %v55_v1  ;;  %v197_v38 = vpop.f32.mrf.mxu1  ;;  %v260_v31 = vpop.permute.xlu1 %259 }
  0xcd   :  { %v1583_v39 = vmax.f32 %v196_v33, 0.0  ;;  %v198_v40 = vadd.f32 %v197_v38, %v55_v1  ;;  %v665_v1 = vsel %vm439_vm2, %v1555_v2, %v1565_v14  ;;  %v262_v14 = vpop.permute.xlu0 %261 }
  0xce   :  { %v1587_v42 = vmax.f32 %v137_v37, 0.0  ;;  %v745_v43 = vmul.f32 %v730_v9, %v1581_v36  ;;  %v673_v44 = vmul.f32 %v1555_v2, %v1581_v36  ;;  %v817_v47 = vmul.f32 %v802_v3, %v1581_v36 }
  0xcf   :  { %v1593_v46 = vmax.f32 %v198_v40, 0.0  ;;  %v819_v51 = vmul.f32 %v810_v0, %v1583_v39  ;;  %v601_v55 = vmul.f32 %v586_v11, %v1581_v36  ;;  %v747_v0 = vmul.f32 %v738_v58, %v1583_v39 }
  0xd0   :  { %755 = vrot.lane.b32.xlu1 %v745_v43, %s1367_s27  ;;  %683 = vrot.lane.b32.xlu0 %v673_v44, %s1364_s16  ;;  %v818_v48 = vmul.f32 %v809_v45, %v1587_v42  ;;  %v746_v57 = vmul.f32 %v737_v50, %v1587_v42  ;;  %v739_v3 = vsel %vm90_vm0, %v734_v10, %v736_v25  ;;  %v330_v38 = vpop.permute.xlu1 %329 }
  0xd1   :  { %v820_v52 = vmul.f32 %v811_v7, %v1593_v46  ;;  %v676_v56 = vmul.f32 %v667_v49, %v1593_v46  ;;  %v602_v6 = vmul.f32 %v593_v61, %v1587_v42  ;;  %v603_v7 = vmul.f32 %v594_v62, %v1583_v39 }
  0xd2   :  { %v1273_v54 = vpack.i.bf16 %v818_v48, %v817_v47  ;;  %v748_v9 = vmul.f32 %v739_v3, %v1593_v46  ;;  %v674_v11 = vmul.f32 %v665_v1, %v1587_v42  ;;  %v1293_v15 = vpack.i.bf16 %v747_v0, %v746_v57  ;;  %v332_v48 = vpop.permute.xlu0 %331 }
  0xd3   :  { %v1278_v59 = vpack.i.bf16 %v820_v52, %v819_v51  ;;  %v1288_v8 = vpack.i.bf16 %v677_v60, %v676_v56  ;;  %v1303_v22 = vpack.i.bf16 %v603_v7, %v602_v6  ;;  %v675_v2 = vmul.f32 %v666_v19, %v1583_v39 }
  0xd4   :  { %1274 = vrot.lane.b32.xlu1 %v1273_v54, %s1366_s24  ;;  %611 = vrot.lane.b32.xlu0 %v601_v55, %s1365_s21  ;;  %v595_v10 = vsel %vm513_vm3, %v1561_v12, %v592_v27  ;;  %v1298_v32 = vpack.i.bf16 %v749_v24, %v748_v9  ;;  %v421_v12 = vmul.f32 %v412_v5, %v1587_v42  ;;  %v48_v24 = vld [vmem:[%s1908_s2 + $0x8] sm:$0xff] }
  0xd5   :  { %v1283_v33 = vpack.i.bf16 %v675_v2, %v674_v11  ;;  %v604_v34 = vmul.f32 %v595_v10, %v1593_v46  ;;  %v411_v27 = vsel %vm410_vm4, %v1563_v13, %v1575_v28  ;;  %v486_v37 = vsel %vm484_vm5, %v1579_v35, %v1585_v41  ;;  %v906_v2 = vld [vmem:[%s1911_s5] sm:$0xff]  ;;  %v1025_v10 = vld [vmem:[%s1910_s7 + $0x10] sm:$0xff] }
  0xd6   :  { %v420_v40 = vmul.f32 %v411_v27, %v1581_v36  ;;  %v423_v44 = vmul.f32 %v1577_v29, %v1593_v46  ;;  %v495_v45 = vmul.f32 %v486_v37, %v1587_v42  ;;  %v413_v13 = vsel %vm410_vm4, %v1569_v16, %v1577_v29  ;;  %v334_v29 = vpop.permute.xlu1 %333  ;;  %v336_v60 = vpop.permute.xlu0 %335 }
  0xd7   :  { %v1308_v25 = vpack.i.bf16 %v605_v30, %v604_v34  ;;  %v485_v28 = vsel %vm484_vm5, %v1571_v21, %v1579_v35  ;;  %v265_v47 = vsel %vm263_vm6, %v258_v26, %v260_v31  ;;  %v422_v49 = vmul.f32 %v413_v13, %v1583_v39  ;;  %v1356_v21 = vld [vmem:[%s1907_s1 + $0x10] ss:$0 sps:$4 sm:$0xff]  }
  0xd8   :  { %1289 = vrot.lane.b32.xlu1 %v1288_v8, %s1364_s16  ;;  %1279 = vrot.lane.b32.xlu0 %v1278_v59, %s1366_s24  ;;  %v1313_v43 = vpack.i.bf16 %v421_v12, %v420_v40  ;;  %v494_v50 = vmul.f32 %v485_v28, %v1581_v36  ;;  %v487_v51 = vsel %vm484_vm5, %v1585_v41, %v1604_v53  ;;  %v49_v30 = vld [vmem:[%s1908_s2 + $0x10] sm:$0xff] }
  0xd9   :  { %v264_v16 = vsel %vm263_vm6, %v1613_v63, %v258_v26  ;;  %v1318_v35 = vpack.i.bf16 %v423_v44, %v422_v49  ;;  %v497_v54 = vmul.f32 %v1604_v53, %v1593_v46  ;;  %v274_v55 = vmul.f32 %v265_v47, %v1587_v42  ;;  %1239 = vmatmul.mubr.msk.bf16.gmra.mxu0 %vm90_vm0, %v1356_v21  ;;  %v50_v26 = vld [vmem:[%s1908_s2 + $0x18] sm:$0xff] }
  0xda   :  { %v1323_v52 = vpack.i.bf16 %v495_v45, %v494_v50  ;;  %v339_v56 = vsel %vm337_vm7, %v332_v48, %v334_v29  ;;  %1242 = vmatmul.mubr.msk.bf16.gmra.mxu1 %vm90_vm0, %v1356_v21  ;;  %v496_v41 = vmul.f32 %v487_v51, %v1583_v39  ;;  %v273_v57 = vmul.f32 %v264_v16, %v1581_v36 }
  0xdb   :  { %v266_v58 = vsel %vm263_vm6, %v260_v31, %v262_v14  ;;  %v338_v53 = vsel %vm337_vm7, %v330_v38, %v332_v48  ;;  %1002 = vmatprep.mubr.bf16.mxu1 %v1359_v4  ;;  %961 = vmatprep.mubr.bf16.mxu0 %v1359_v4  ;;  %v348_v59 = vmul.f32 %v339_v56, %v1587_v42  ;;  %v51_v31 = vld [vmem:[%s1908_s2 + $0x20] sm:$0xff] }
  0xdc   :  { %1299 = vrot.lane.b32.xlu1 %v1298_v32, %s1367_s27  ;;  %1284 = vrot.lane.b32.xlu0 %v1283_v33, %s1364_s16  ;;  %v1328_v61 = vpack.i.bf16 %v497_v54, %v496_v41  ;;  %v1333_v62 = vpack.i.bf16 %v274_v55, %v273_v57  ;;  %v276_v0 = vmul.f32 %v262_v14, %v1593_v46  ;;  %v1024_v32 = vld [vmem:[%s1910_s7 + $0x8] sm:$0xff]  ;;  %v1026_v33 = vld [vmem:[%s1910_s7 + $0x18] sm:$0xff] }
  0xdd   :  { %v275_v1 = vmul.f32 %v266_v58, %v1583_v39  ;;  %v347_v3 = vmul.f32 %v338_v53, %v1581_v36  ;;  %v340_v6 = vsel %vm337_vm7, %v334_v29, %v336_v60  ;;  %v350_v7 = vmul.f32 %v336_v60, %v1593_v46  ;;  %v1246_v55 = vld [vmem:[%s1909_s4 + $0x10] sm:$0xf] }
  0xde   :  { %v349_v11 = vmul.f32 %v340_v6, %v1583_v39  ;;  %v548_v57 = vrot.slane %v1246_v55, %v1458_v23  ;;  %v536_v23 = vrot.slane %v1246_v55, %v1449_v18  ;;  %v544_v6 = vrot.slane %v1246_v55, %v1454_v20 }
  0xdf   :  { %v1338_v8 = vpack.i.bf16 %v276_v0, %v275_v1  ;;  %v1343_v9 = vpack.i.bf16 %v348_v59, %v347_v3 }
  0xe0   :  { %1309 = vrot.lane.b32.xlu1 %v1308_v25, %s1365_s21  ;;  %1294 = vrot.lane.b32.xlu0 %v1293_v15, %s1367_s27  ;;  %v272_v15 = vmul.f32 0.0, %v1613_v63  ;;  %v1348_v19 = vpack.i.bf16 %v350_v7, %v349_v11  ;;  %v1023_v63 = vld [vmem:[%s1910_s7] sm:$0xff]  ;;  %v540_v7 = vrot.slane %v1246_v55, %v1447_v17 }
  0xe4   :  { %1304 = vrot.lane.b32.xlu0 %v1303_v22, %s1365_s21  ;;  %1314 = vrot.lane.b32.xlu1 %v1313_v43, %s1361_s29  ;;  %v346_v22 = vmul.f32 0.0, %v330_v38 }
  0xe8   :  { %1319 = vrot.lane.b32.xlu0 %v1318_v35, %s1361_s29  ;;  %1324 = vrot.lane.b32.xlu1 %v1323_v52, %s1363_s13 }
  0xec   :  { %1329 = vrot.lane.b32.xlu0 %v1328_v61, %s1363_s13  ;;  %1334 = vrot.lane.b32.xlu1 %v1333_v62, %s1360_s0 }
  0xf0   :  { %1339 = vrot.lane.b32.xlu0 %v1338_v8, %s1360_s0  ;;  %1344 = vrot.lane.b32.xlu1 %v1343_v9, %s1362_s10 }
  0xf4   :  { %1349 = vrot.lane.b32.xlu0 %v1348_v19, %s1362_s10  ;;  %282 = vrot.lane.b32.xlu1 %v272_v15, %s1360_s0 }
  0xf8   :  { %356 = vrot.lane.b32.xlu0 %v346_v22, %s1362_s10  ;;  %909 = vperm.xlu1 %1353, %v906_v2  }
  0xfc   :  { %59 = vperm.xlu0 %1272, %v48_v24   ;;  %64 = vperm.xlu1 %1353, %v49_v30  }
  0xfe   :  { %v836_v34 = vpop.permute.xlu1 %835 }
 0x100   :  { %69 = vperm.xlu0 %1272, %v50_v26   ;;  %74 = vperm.xlu1 %1353, %v51_v31   ;;  %v556_v26 = vmul.f32 %v548_v57, %v1593_v46  ;;  %v553_v46 = vmul.f32 %v536_v23, %v1581_v36 }
 0x104   :  { %1029 = vperm.xlu0 %1272, %v1023_v63   ;;  %1034 = vperm.xlu1 %1353, %v1024_v32  }
 0x108   :  { %1039 = vperm.xlu0 %1272, %v1025_v10   ;;  %1044 = vperm.xlu1 %1353, %v1026_v33  }
 0x10f   :  { %v1730_v14 = vpop.permute.xlu1 %429 }
 0x117   :  { %v1728_v5 = vpop.permute.xlu0 %503 }
 0x142   :  { %v756_v25 = vpop.permute.xlu1 %755  ;;  %v684_v12 = vpop.permute.xlu0 %683 }
 0x146   :  { %v1275_v27 = vpop.permute.xlu1 %1274  ;;  %v1732_v37 = vpop.permute.xlu0 %611 }
 0x147   :  { %v1277_v38 = vunpack.i.h.bf16 %v1275_v27  ;;  %v1276_v40 = vunpack.i.l.bf16 %v1275_v27  ;;  %v555_v27 = vmul.f32 %v544_v6, %v1583_v39 }
 0x149   :  { %v837_v43 = vsel %vm263_vm6, %v1276_v40, %v1277_v38 }
 0x14a   :  { %v1290_v44 = vpop.permute.xlu1 %1289  ;;  %v1280_v45 = vpop.permute.xlu0 %1279  ;;  %v901_v48 = vpack.c.bf16 %v837_v43, %v837_v43 }
 0x14b   :  { %v1282_v13 = vunpack.i.h.bf16 %v1280_v45  ;;  %v1281_v28 = vunpack.i.l.bf16 %v1280_v45  ;;  %v1292_v47 = vunpack.i.h.bf16 %v1290_v44  ;;  %v1291_v49 = vunpack.i.l.bf16 %v1290_v44 }
 0x14c   :  { %v918_v59 = vsel %vm916_vm8, %v901_v48, 0 }
 0x14d   :  { %v840_v50 = vsel %vm263_vm6, %v1282_v13, %v836_v34  ;;  %v838_v51 = vsel %vm263_vm6, %v1277_v38, %v1281_v28  ;;  %v839_v16 = vsel %vm263_vm6, %v1281_v28, %v1282_v13  ;;  %v696_v61 = vsel %vm410_vm4, %v1291_v49, %v1292_v47 }
 0x14e   :  { %v904_v21 = vpack.c.bf16 %v840_v50, %v840_v50  ;;  %v902_v29 = vpack.c.bf16 %v838_v51, %v838_v51  ;;  %v1300_v35 = vpop.permute.xlu1 %1299  ;;  %v1285_v52 = vpop.permute.xlu0 %1284  ;;  %v903_v54 = vpack.c.bf16 %v839_v16, %v839_v16  ;;  %v554_v28 = vmul.f32 %v540_v7, %v1587_v42 }
 0x14f   :  { %v1302_v56 = vunpack.i.h.bf16 %v1300_v35  ;;  %v1301_v41 = vunpack.i.l.bf16 %v1300_v35  ;;  %v1287_v58 = vunpack.i.h.bf16 %v1285_v52  ;;  %v1286_v53 = vunpack.i.l.bf16 %v1285_v52 }
 0x150   :  { %1251 = vmatprep.subr.msk.bf16.mxu0 %vm916_vm8, %v902_v29  ;;  %1253 = vmatprep.subr.msk.bf16.mxu1 %vm916_vm8, %v904_v21  ;;  %v924_v60 = vsel %vm916_vm8, %v903_v54, 0 }
 0x151   :  { %936 = vmatpush1.bf16.msra.mxu0 %v918_v59  ;;  %977 = vmatpush1.bf16.msra.mxu1 %v924_v60  ;;  %v768_v62 = vsel %vm337_vm7, %v1301_v41, %v1302_v56  ;;  %v695_v19 = vsel %vm410_vm4, %v1287_v58, %v1291_v49  ;;  %v693_v22 = vsel %vm410_vm4, %v684_v12, %v1286_v53 }
 0x152   :  { %v1310_v0 = vpop.permute.xlu1 %1309  ;;  %v1295_v1 = vpop.permute.xlu0 %1294  ;;  %v900_v3 = vpack.c.bf16 %v768_v62, %v696_v61  ;;  %v694_v24 = vsel %vm410_vm4, %v1286_v53, %v1287_v58 }
 0x153   :  { %v1312_v8 = vunpack.i.h.bf16 %v1310_v0  ;;  %v1311_v9 = vunpack.i.l.bf16 %v1310_v0  ;;  %v1297_v11 = vunpack.i.h.bf16 %v1295_v1  ;;  %v1296_v15 = vunpack.i.l.bf16 %v1295_v1 }
 0x154   :  { %978 = vmatprep.subr.bf16.mxu1 %v900_v3 }
 0x155   :  { %v767_v63 = vsel %vm337_vm7, %v1297_v11, %v1301_v41  ;;  %v765_v18 = vsel %vm337_vm7, %v756_v25, %v1296_v15  ;;  %v766_v20 = vsel %vm337_vm7, %v1296_v15, %v1297_v11  ;;  %v624_v17 = vsel %vm484_vm5, %v1311_v9, %v1312_v8 }
 0x156   :  { %v897_v2 = vpack.c.bf16 %v765_v18, %v693_v22  ;;  %v899_v10 = vpack.c.bf16 %v767_v63, %v695_v19  ;;  %v1305_v30 = vpop.permute.xlu0 %1304  ;;  %v1315_v31 = vpop.permute.xlu1 %1314  ;;  %v898_v32 = vpack.c.bf16 %v766_v20, %v694_v24  ;;  %v896_v33 = vpack.c.bf16 %v624_v17, %v556_v26 }
 0x157   :  { %v1307_v34 = vunpack.i.h.bf16 %v1305_v30  ;;  %v1306_v12 = vunpack.i.l.bf16 %v1305_v30  ;;  %v1317_v40 = vunpack.i.h.bf16 %v1315_v31  ;;  %v1316_v43 = vunpack.i.l.bf16 %v1315_v31  ;;  %v905_v31 = vld [vmem:[%s1912_s3] sm:$0xf] }
 0x158   :  { %937 = vmatprep.subr.bf16.mxu0 %v898_v32  ;;  %979 = vmatpush1.bf16.msra.mxu1 %v899_v10  ;;  %v1789_v32 = vpop.f32.mrf.mxu0 }
 0x159   :  { %v623_v25 = vsel %vm484_vm5, %v1307_v34, %v1311_v9  ;;  %v621_v38 = vsel %vm484_vm5, %v1732_v37, %v1306_v12  ;;  %938 = vmatpush1.bf16.msra.mxu0 %v897_v2  ;;  %980 = vmatprep.subr.bf16.mxu1 %v896_v33  ;;  %v622_v39 = vsel %vm484_vm5, %v1306_v12, %v1307_v34  ;;  %v199_v33 = vpop.f32.mrf.mxu1 }
 0x15a   :  { %v895_v44 = vpack.c.bf16 %v623_v25, %v555_v27  ;;  %v1320_v45 = vpop.permute.xlu0 %1319  ;;  %v1325_v13 = vpop.permute.xlu1 %1324  ;;  %v893_v47 = vpack.c.bf16 %v621_v38, %v553_v46  ;;  %v894_v51 = vpack.c.bf16 %v622_v39, %v554_v28  ;;  %v441_v16 = vsel %vm439_vm2, %v1316_v43, %v1317_v40 }
 0x15b   :  { %v1327_v36 = vunpack.i.h.bf16 %v1325_v13  ;;  %v1326_v48 = vunpack.i.l.bf16 %v1325_v13  ;;  %v1322_v49 = vunpack.i.h.bf16 %v1320_v45  ;;  %v1321_v50 = vunpack.i.l.bf16 %v1320_v45  ;;  %v1791_v34 = vpop.f32.mrf.mxu0  ;;  %v1793_v12 = vpop.f32.mrf.mxu1 }
 0x15c   :  { %981 = vmatpush1.bf16.msra.mxu1 %v895_v44  ;;  %v440_v29 = vsel %vm439_vm2, %v1730_v14, %v1316_v43  ;;  %939 = vmatprep.subr.bf16.mxu0 %v894_v51 }
 0x15d   :  { %v514_v37 = vsel %vm513_vm3, %v1728_v5, %v1326_v48  ;;  %v515_v21 = vsel %vm513_vm3, %v1326_v48, %v1327_v36  ;;  %940 = vmatpush1.bf16.msra.mxu0 %v893_v47  ;;  %v442_v41 = vsel %vm439_vm2, %v1317_v40, %v1321_v50  ;;  %v443_v5 = vsel %vm439_vm2, %v1321_v50, %v1322_v49  ;;  %v1795_v27 = vpop.f32.mrf.mxu0  ;;  %v1797_v46 = vpop.f32.mrf.mxu1 }
 0x15e   :  { %v1330_v42 = vpop.permute.xlu0 %1329  ;;  %v1335_v35 = vpop.permute.xlu1 %1334  ;;  %v890_v52 = vpack.c.bf16 %v515_v21, %v441_v16  ;;  %v889_v54 = vpack.c.bf16 %v514_v37, %v440_v29 }
 0x15f   :  { %v1332_v55 = vunpack.i.h.bf16 %v1330_v42  ;;  %v1331_v56 = vunpack.i.l.bf16 %v1330_v42  ;;  %v1337_v58 = vunpack.i.h.bf16 %v1335_v35  ;;  %v1336_v53 = vunpack.i.l.bf16 %v1335_v35  ;;  %v1799_v25 = vpop.f32.mrf.mxu0  ;;  %v1801_v38 = vpop.f32.mrf.mxu1 }
 0x160   :  { %941 = vmatprep.subr.bf16.mxu0 %v890_v52 }
 0x161   :  { %v516_v57 = vsel %vm513_vm3, %v1327_v36, %v1331_v56  ;;  %v517_v59 = vsel %vm513_vm3, %v1331_v56, %v1332_v55  ;;  %942 = vmatpush1.bf16.msra.mxu0 %v889_v54  ;;  %v294_v6 = vsel %vm292_vm1, %v1336_v53, %v1337_v58  ;;  %v1803_v40 = vpop.f32.mrf.mxu0  ;;  %v1805_v43 = vpop.f32.mrf.mxu1 }
 0x162   :  { %v891_v14 = vpack.c.bf16 %v516_v57, %v442_v41  ;;  %v1340_v60 = vpop.permute.xlu0 %1339  ;;  %v1345_v61 = vpop.permute.xlu1 %1344  ;;  %v892_v62 = vpack.c.bf16 %v517_v59, %v443_v5 }
 0x163   :  { %v1347_v0 = vunpack.i.h.bf16 %v1345_v61  ;;  %v1346_v1 = vunpack.i.l.bf16 %v1345_v61  ;;  %v1342_v3 = vunpack.i.h.bf16 %v1340_v60  ;;  %v1341_v23 = vunpack.i.l.bf16 %v1340_v60  ;;  %v1807_v44 = vpop.f32.mrf.mxu0  ;;  %v1809_v45 = vpop.f32.mrf.mxu1 }
 0x164   :  { %982 = vmatprep.subr.bf16.mxu1 %v892_v62 }
 0x165   :  { %983 = vmatpush1.bf16.msra.mxu1 %v891_v14  ;;  %v367_v7 = vsel %vm90_vm0, %v1346_v1, %v1347_v0  ;;  %v295_v22 = vsel %vm292_vm1, %v1337_v58, %v1341_v23  ;;  %v296_v26 = vsel %vm292_vm1, %v1341_v23, %v1342_v3  ;;  %v1358_v23 = vld [vmem:[%s1913_s6 + $0x8] sm:$0xff]  }
 0x166   :  { %v1350_v8 = vpop.permute.xlu0 %1349  ;;  %v886_v9 = vpack.c.bf16 %v367_v7, %v294_v6  ;;  %v283_v19 = vpop.permute.xlu1 %282 }
 0x167   :  { %v1352_v11 = vunpack.i.h.bf16 %v1350_v8  ;;  %v1351_v15 = vunpack.i.l.bf16 %v1350_v8  ;;  %v293_v2 = vsel %vm292_vm1, %v283_v19, %v1336_v53 }
 0x168   :  { %943 = vmatprep.subr.bf16.mxu0 %v886_v9 }
 0x169   :  { %v368_v24 = vsel %vm90_vm0, %v1347_v0, %v1351_v15  ;;  %v369_v63 = vsel %vm90_vm0, %v1351_v15, %v1352_v11 }
 0x16a   :  { %v887_v18 = vpack.c.bf16 %v368_v24, %v295_v22  ;;  %v357_v20 = vpop.permute.xlu0 %356  ;;  %v888_v17 = vpack.c.bf16 %v369_v63, %v296_v26 }
 0x16b   :  { %v366_v10 = vsel %vm90_vm0, %v357_v20, %v1346_v1  ;;  %v1357_v1 = vld [vmem:[%s1913_s6] sm:$0xff]  }
 0x16c   :  { %v885_v30 = vpack.c.bf16 %v366_v10, %v293_v2  ;;  %984 = vmatprep.subr.bf16.mxu1 %v888_v17 }
 0x16d   :  { %985 = vmatpush1.bf16.msra.mxu1 %v887_v18 }
 0x16e   :  { %944 = vmatpush1.bf16.msra.mxu0 %v885_v30 }
 0x170   :  { %1254 = vmatmul.mubr.msk.bf16.vlgmr.msra.gmra.mxu1 %vm912_vm9, %v905_v31 }
 0x171   :  { %1252 = vmatmul.mubr.msk.bf16.vlgmr.msra.gmra.mxu0 %vm912_vm9, %v905_v31  ;;  %1161 = vmatprep.mubr.bf16.mxu1 %v1359_v4 }
 0x172   :  { %1108 = vmatprep.mubr.bf16.mxu0 %v1359_v4 }
 0x173   :  { %v910_v51 = vpop.permute.xlu1 %909 }
 0x177   :  { %v60_v6 = vpop.permute.xlu0 %59  ;;  %v65_v8 = vpop.permute.xlu1 %64 }
 0x178   :  { %v200_v19 = vadd.f32 %v199_v33, %v60_v6  ;;  %v139_v26 = vadd.f32 %v1789_v32, %v60_v6  ;;  %v202_v20 = vadd.f32 %v1793_v12, %v60_v6  ;;  %v141_v31 = vadd.f32 %v1791_v34, %v60_v6 }
 0x179   :  { %v206_v33 = vadd.f32 %v1797_v46, %v65_v8 }
 0x17b   :  { %v1831_v7 = vpop.permute.xlu0 %69  ;;  %v1833_v11 = vpop.permute.xlu1 %74 }
 0x17f   :  { %v1030_v9 = vpop.permute.xlu0 %1029  ;;  %v1035_v10 = vpop.permute.xlu1 %1034 }
 0x183   :  { %v1045_v6 = vpop.permute.xlu1 %1044 }
 0x199   :  { %v1811_v13 = vpop.f32.mrf.mxu0 }
 0x19a   :  { %v1813_v28 = vpop.f32.mrf.mxu1 }
 0x19b   :  { %v1815_v39 = vpop.f32.mrf.mxu0 }
 0x19c   :  { %v1817_v47 = vpop.f32.mrf.mxu1 }
 0x19d   :  { %v158_v36 = vpop.f32.mrf.mxu0 }
 0x19e   :  { %v219_v48 = vpop.f32.mrf.mxu1 }
 0x19f   :  { %v159_v49 = vpop.f32.mrf.mxu0 }
 0x1a0   :  { %v220_v50 = vpop.f32.mrf.mxu1 }
 0x230   :  { %v1004_v37 = vpop.f32.mrf.mxu1 }
 0x231   :  { %v1005_v16 = vadd.f32 %v1004_v37, %v910_v51  ;;  %v963_v21 = vpop.f32.mrf.mxu0 }
 0x232   :  { %v964_v29 = vadd.f32 %v963_v21, %v910_v51  ;;  %v1006_v42 = vpop.f32.mrf.mxu1  ;;  %v145_v21 = vadd.f32 %v1795_v27, %v65_v8  ;;  %v147_v27 = vadd.f32 %v1799_v25, %v65_v8  ;;  %v149_v25 = vadd.f32 %v1803_v40, %v1831_v7 }
 0x233   :  { %v1013_v35 = vmax.f32 %v1005_v16, 0.0  ;;  %v1007_v52 = vadd.f32 %v1006_v42, %v910_v51  ;;  %v965_v54 = vpop.f32.mrf.mxu0 }
 0x234   :  { %v1011_v55 = vmax.f32 %v964_v29, 0.0  ;;  %v966_v56 = vadd.f32 %v965_v54, %v910_v51  ;;  %v1008_v41 = vpop.f32.mrf.mxu1 }
 0x235   :  { %v1021_v5 = vpack.c.bf16 %v1013_v35, %v1013_v35  ;;  %v1014_v57 = vmax.f32 %v1007_v52, 0.0  ;;  %v967_v58 = vpop.f32.mrf.mxu0  ;;  %v208_v35 = vadd.f32 %v1801_v38, %v65_v8  ;;  %v210_v38 = vadd.f32 %v1805_v43, %v1831_v7 }
 0x236   :  { %v1019_v53 = vpack.c.bf16 %v1011_v55, %v1011_v55  ;;  %v1012_v59 = vmax.f32 %v966_v56, 0.0  ;;  %v1009_v14 = vpop.f32.mrf.mxu1  ;;  %v1040_v55 = vpop.permute.xlu0 %1039  ;;  %v212_v43 = vadd.f32 %v1809_v45, %v1831_v7 }
 0x237   :  { %v1022_v60 = vpack.c.bf16 %v1014_v57, %v1014_v57  ;;  %v968_v61 = vpop.f32.mrf.mxu0  ;;  %v1071_v62 = vsel %vm916_vm8, %v1021_v5, 0 }
 0x238   :  { %v1020_v0 = vpack.c.bf16 %v1012_v59, %v1012_v59  ;;  %v1065_v3 = vsel %vm916_vm8, %v1019_v53, 0 }
 0x239   :  { %1260 = vmatprep.subr.msk.bf16.mxu1 %vm916_vm8, %v1022_v60 }
 0x23a   :  { %1257 = vmatprep.subr.msk.bf16.mxu0 %vm916_vm8, %v1020_v0  ;;  %1144 = vmatpush1.bf16.msra.mxu1 %v1071_v62 }
 0x23b   :  { %1091 = vmatpush1.bf16.msra.mxu0 %v1065_v3 }
 0x23d   :  { %1261 = vmatmul.mubr.msk.bf16.vlgmr.msra.gmra.mxu1 %vm1057_vm10, %v1357_v1 }
 0x23e   :  { %1258 = vmatmul.mubr.msk.bf16.vlgmr.msra.gmra.mxu0 %vm1057_vm10, %v1357_v1  ;;  %1171 = vmatprep.mubr.bf16.mxu1 %v1359_v4 }
 0x23f   :  { %1118 = vmatprep.mubr.bf16.mxu0 %v1359_v4 }
 0x245   :  { %1262 = vmatmul.mubr.msk.bf16.gmra.mxu1 %vm1057_vm10, %v1358_v23 }
 0x246   :  { %1259 = vmatmul.mubr.msk.bf16.gmra.mxu0 %vm1057_vm10, %v1358_v23 }
 0x2fd   :  { %v1163_v15 = vpop.f32.mrf.mxu1 }
 0x2fe   :  { %v1164_v22 = vadd.f32 %v1163_v15, %v1030_v9  ;;  %v1110_v24 = vpop.f32.mrf.mxu0 }
 0x2ff   :  { %v1111_v4 = vadd.f32 %v1110_v24, %v1030_v9  ;;  %v1165_v63 = vpop.f32.mrf.mxu1  ;;  %v216_v24 = vadd.f32 %v1813_v28, %v1833_v11  ;;  %v218_v28 = vadd.f32 %v1817_v47, %v1833_v11 }
 0x300   :  { %v1184_v18 = vadd.f32 %v1164_v22, %v200_v19  ;;  %v1166_v17 = vadd.f32 %v1165_v63, %v1030_v9  ;;  %v1112_v2 = vpop.f32.mrf.mxu0 }
 0x301   :  { %v1182_v30 = vadd.f32 %v1111_v4, %v139_v26  ;;  %v1113_v36 = vadd.f32 %v1112_v2, %v1030_v9  ;;  %v1167_v48 = vpop.f32.mrf.mxu1  ;;  %v151_v9 = vadd.f32 %v1807_v44, %v1831_v7  ;;  %v155_v44 = vadd.f32 %v1811_v13, %v1833_v11 }
 0x302   :  { %v1200_v49 = vmax.f32 %v1184_v18, 0.0  ;;  %v1185_v50 = vadd.f32 %v1166_v17, %v202_v20  ;;  %v1168_v51 = vadd.f32 %v1167_v48, %v1035_v10  ;;  %v1114_v37 = vpop.f32.mrf.mxu0  ;;  %v157_v13 = vadd.f32 %v1815_v39, %v1833_v11 }
 0x303   :  { %v1198_v32 = vmax.f32 %v1182_v30, 0.0  ;;  %v1183_v16 = vadd.f32 %v1113_v36, %v141_v31  ;;  %v1115_v29 = vadd.f32 %v1114_v37, %v1035_v10  ;;  %v1169_v12 = vpop.f32.mrf.mxu1 }
 0x304   :  { %1216 = vst [vmem:[%s1914_s8 + $0x10] sm:$0xff] %v1200_v49  ;;  %v1201_v42 = vmax.f32 %v1185_v50, 0.0  ;;  %v1188_v34 = vadd.f32 %v1168_v51, %v206_v33  ;;  %v1170_v52 = vadd.f32 %v1169_v12, %v1035_v10  ;;  %v1116_v54 = vpop.f32.mrf.mxu0 }
 0x305   :  { %1214 = vst [vmem:[%s1914_s8] sm:$0xff] %v1198_v32  ;;  %v1199_v46 = vmax.f32 %v1183_v16, 0.0  ;;  %v1186_v56 = vadd.f32 %v1115_v29, %v145_v21  ;;  %v1117_v41 = vadd.f32 %v1116_v54, %v1035_v10  ;;  %v1173_v5 = vpop.f32.mrf.mxu1 }
 0x306   :  { %1217 = vst [vmem:[%s1914_s8 + $0x18] sm:$0xff] %v1201_v42  ;;  %v1204_v57 = vmax.f32 %v1188_v34, 0.0  ;;  %v1189_v58 = vadd.f32 %v1170_v52, %v208_v35  ;;  %v1174_v53 = vadd.f32 %v1173_v5, %v1040_v55  ;;  %v1120_v59 = vpop.f32.mrf.mxu0 }
 0x307   :  { %1215 = vst [vmem:[%s1914_s8 + $0x8] sm:$0xff] %v1199_v46  ;;  %v1202_v14 = vmax.f32 %v1186_v56, 0.0  ;;  %v1187_v60 = vadd.f32 %v1117_v41, %v147_v27  ;;  %v1121_v61 = vadd.f32 %v1120_v59, %v1040_v55  ;;  %v1175_v62 = vpop.f32.mrf.mxu1 }
 0x308   :  { %1220 = vst [vmem:[%s1914_s8 + $0x30] sm:$0xff] %v1204_v57  ;;  %v1205_v0 = vmax.f32 %v1189_v58, 0.0  ;;  %v1192_v1 = vadd.f32 %v1174_v53, %v210_v38  ;;  %v1176_v3 = vadd.f32 %v1175_v62, %v1040_v55  ;;  %v1122_v23 = vpop.f32.mrf.mxu0 }
 0x309   :  { %1218 = vst [vmem:[%s1914_s8 + $0x20] sm:$0xff] %v1202_v14  ;;  %v1203_v8 = vmax.f32 %v1187_v60, 0.0  ;;  %v1190_v40 = vadd.f32 %v1121_v61, %v149_v25  ;;  %v1123_v15 = vadd.f32 %v1122_v23, %v1040_v55  ;;  %v1177_v19 = vpop.f32.mrf.mxu1 }
 0x30a   :  { %1221 = vst [vmem:[%s1914_s8 + $0x38] sm:$0xff] %v1205_v0  ;;  %v1208_v22 = vmax.f32 %v1192_v1, 0.0  ;;  %v1193_v45 = vadd.f32 %v1176_v3, %v212_v43  ;;  %v1178_v26 = vadd.f32 %v1177_v19, %v1045_v6  ;;  %v1124_v4 = vpop.f32.mrf.mxu0 }
 0x30b   :  { %1219 = vst [vmem:[%s1914_s8 + $0x28] sm:$0xff] %v1203_v8  ;;  %v1206_v63 = vmax.f32 %v1190_v40, 0.0  ;;  %v1191_v18 = vadd.f32 %v1123_v15, %v151_v9  ;;  %v1125_v7 = vadd.f32 %v1124_v4, %v1045_v6  ;;  %v1179_v20 = vpop.f32.mrf.mxu1 }
 0x30c   :  { %1224 = vst [vmem:[%s1914_s8 + $0x50] sm:$0xff] %v1208_v22  ;;  %v1209_v17 = vmax.f32 %v1193_v45, 0.0  ;;  %v1196_v2 = vadd.f32 %v1178_v26, %v216_v24  ;;  %v1180_v10 = vadd.f32 %v1179_v20, %v1045_v6  ;;  %v1126_v30 = vpop.f32.mrf.mxu0 }
 0x30d   :  { %1222 = vst [vmem:[%s1914_s8 + $0x40] sm:$0xff] %v1206_v63  ;;  %v1207_v31 = vmax.f32 %v1191_v18, 0.0  ;;  %v1194_v36 = vadd.f32 %v1125_v7, %v155_v44  ;;  %v1127_v48 = vadd.f32 %v1126_v30, %v1045_v6 }
 0x30e   :  { %1225 = vst [vmem:[%s1914_s8 + $0x58] sm:$0xff] %v1209_v17  ;;  %v1212_v49 = vmax.f32 %v1196_v2, 0.0  ;;  %v1197_v50 = vadd.f32 %v1180_v10, %v218_v28 }
 0x30f   :  { %1223 = vst [vmem:[%s1914_s8 + $0x48] sm:$0xff] %v1207_v31  ;;  %v1210_v47 = vmax.f32 %v1194_v36, 0.0  ;;  %v1195_v33 = vadd.f32 %v1127_v48, %v157_v13 }
 0x310   :  { %1228 = vst [vmem:[%s1914_s8 + $0x70] sm:$0xff] %v1212_v49  ;;  %v1213_v51 = vmax.f32 %v1197_v50, 0.0 }
 0x311   :  { %1226 = vst [vmem:[%s1914_s8 + $0x60] sm:$0xff] %v1210_v47  ;;  %v1211_v39 = vmax.f32 %v1195_v33, 0.0 }
 0x312   :  { %1229 = vst [vmem:[%s1914_s8 + $0x78] sm:$0xff] %v1213_v51 }
 0x313   :  { %1227 = vst [vmem:[%s1914_s8 + $0x68] sm:$0xff] %v1211_v39 }

</bundles_post_ra>
